<compile_context>
chip_gen: v5e
topology: v5e:2x2
jax: 0.10.0
libtpu: 0.0.40
codegen_flags: <defaults>
</compile_context>

<pallas_src>
import functools

import jax
import jax.numpy as jnp
from jax.experimental import pallas as pl
from jax.experimental.pallas import tpu as pltpu

LEAKY_SLOPE = 0.01   # nn.LeakyReLU() default negative_slope
MLP_SCALE = 0.01     # HybridModel.mlp_scale


def _leaky_relu(x):
    # slope < 1  =>  max(x, slope*x) == leaky_relu(x); one VPU max per element.
    return jnp.maximum(x, LEAKY_SLOPE * x)


def _round_up(x, m):
    return (x + m - 1) // m * m


def _num_tensorcores():
    """2 TensorCores per chip on v7x, 1 on v5e/v6e (best-effort detection)."""
    try:
        kind = jax.devices()[0].device_kind.lower()
    except Exception:
        return 1
    return 2 if "v7" in kind else 1


_NUM_TC = _num_tensorcores()


def _default_tm(n, num_tc):
    """Row-tile heuristic.

    v5e/v6e (1 TC): fewest grid steps wins -- one step up to 2048 rows, then
    2048-row tiles (amortizes the ~0.35us per-step Pallas overhead; VMEM use
    at tm=2048 is a few MiB incl. double buffers and lane padding -> fits even
    v7x's 32 MiB scoped default).
    v7x (2 TC): for n > 512 pick tm so the grid has an even number of steps
    >= 2 so "parallel" semantics shard both TensorCores evenly.
    """
    if num_tc >= 2 and n > 512:
        if n <= 4096:
            return _round_up(pl.cdiv(n, 2), 8)
        steps = pl.cdiv(n, 2048)
        steps += steps % 2                      # even step count
        return _round_up(pl.cdiv(n, steps), 8)
    if n <= 2048:
        return _round_up(n, 8)
    return 2048


def nam_kernel(x_ref, wcat_ref, w2_ref, w3_ref, o_ref):
    """One row-tile; all weights VMEM-resident (constant index_maps).

    wcat = [W1.T | W_fmap.T], shape (Din, width + Dout): a single MXU push for
    the two matmuls that share LHS `v` (the K=Din contraction under-fills the
    MXU, so fuse along output columns instead of issuing twice).  W3 arrives
    pre-scaled by mlp_scale, so the epilogue is just fmap + t.  All matmuls
    use bf16 operands with f32 accumulation.
    """
    width = w2_ref.shape[0]

    v = x_ref[...].astype(jnp.bfloat16)

    z = jnp.dot(v, wcat_ref[...], preferred_element_type=jnp.float32)
    h_pre = z[:, :width]           # lane-aligned (width == 128)
    fmap = z[:, width:]            # starts on a vreg boundary

    h = _leaky_relu(h_pre).astype(jnp.bfloat16)
    h = _leaky_relu(
        jnp.dot(h, w2_ref[...], preferred_element_type=jnp.float32)
    ).astype(jnp.bfloat16)
    t = jnp.dot(h, w3_ref[...], preferred_element_type=jnp.float32)

    # TODO(synk): if a v5e bundle dump shows the 32-lane masked stores exposed,
    # repack the (tm, 32) result to a lane-dense (tm/4, 128) output view.
    o_ref[...] = (fmap + t).astype(o_ref.dtype)


def prepare_weights(wf_t, w1_t, w2_t, w3_t):
    """Once-per-model weight prep (do NOT call per forward).

    Inputs are transposed torch Linear weights, shape (in, out):
      wf_t (Din, Dout), w1_t (Din, width), w2_t (width, width), w3_t (width, Dout).
    Returns bf16 (wcat, w2b, w3b) with mlp_scale folded into w3b.
    """
    wcat = jnp.concatenate([w1_t, wf_t], axis=1).astype(jnp.bfloat16)
    w2b = w2_t.astype(jnp.bfloat16)
    w3b = (MLP_SCALE * w3_t).astype(jnp.bfloat16)
    return wcat, w2b, w3b


@functools.partial(jax.jit, static_argnames=("tm",))
def neural_adjoint_map_forward(x, wcat, w2b, w3b, *, tm=None):
    """x: (N, >=Din). wcat/w2b/w3b come from prepare_weights()."""
    n = x.shape[0]
    input_dim = wcat.shape[0]
    width = w2b.shape[0]
    dout = w3b.shape[1]

    verts = x[:, :input_dim]       # x[:, :self.input_dim]

    if tm is None:
        tm = _default_tm(n, _NUM_TC)

    grid_steps = pl.cdiv(n, tm)

    flops = 2 * n * (input_dim * (width + dout) + width * width + width * dout)
    bytes_accessed = (
        n * (input_dim + dout) * 4                                   # activations (f32)
        + (input_dim * (width + dout) + width * width + width * dout) * 2  # bf16 weights
    )

    out = pl.pallas_call(
        nam_kernel,
        out_shape=jax.ShapeDtypeStruct((n, dout), x.dtype),
        grid_spec=pltpu.PrefetchScalarGridSpec(
            num_scalar_prefetch=0,
            grid=(grid_steps,),
            in_specs=[
                pl.BlockSpec((tm, input_dim), lambda i: (i, 0)),
                # Constant index_maps: weights stay resident, no per-step DMA.
                pl.BlockSpec((input_dim, width + dout), lambda i: (0, 0)),
                pl.BlockSpec((width, width), lambda i: (0, 0)),
                pl.BlockSpec((width, dout), lambda i: (0, 0)),
            ],
            out_specs=pl.BlockSpec((tm, dout), lambda i: (i, 0)),
        ),
        compiler_params=pltpu.CompilerParams(
            dimension_semantics=("parallel",)),
        cost_estimate=pl.CostEstimate(
            flops=flops, transcendentals=0, bytes_accessed=bytes_accessed),
    )(verts, wcat, w2b, w3b)

    # .squeeze() at the end of HybridModel.forward
    return jnp.squeeze(out)


def xavier_uniform(key, shape):
    """nn.init.xavier_uniform_ for a torch Linear weight of shape (out, in)."""
    fan_out, fan_in = shape
    bound = (6.0 / (fan_in + fan_out)) ** 0.5
    return jax.random.uniform(key, shape, jnp.float32, -bound, bound)


def reference_forward(x, wf_t, w1_t, w2_t, w3_t):
    """Pure-JAX f32 reference of HybridModel.forward (depth=2)."""
    def lrelu(v):
        return jnp.where(v >= 0, v, LEAKY_SLOPE * v)
    v = x[:, : wf_t.shape[0]].astype(jnp.float32)
    fmap = v @ wf_t
    h = lrelu(v @ w1_t)
    h = lrelu(h @ w2_t)
    t = h @ w3_t
    return jnp.squeeze(fmap + MLP_SCALE * t)


if __name__ == "__main__":
    # NeuralAdjointMap defaults: input_dim = embedding2.shape[-1],
    # output_dim = embedding1.shape[-1], HybridModel(width=128, depth=2).
    N, DIN, DOUT, WIDTH = 256, 32, 32, 128

    key = jax.random.PRNGKey(0)
    kx, kf, k1, k2, k3 = jax.random.split(key, 5)

    x = jax.random.normal(kx, (N, DIN), jnp.float32)

    # Torch Linear weights are (out, in); init them that way, then transpose.
    w_fmap = xavier_uniform(kf, (DOUT, DIN))
    w1 = xavier_uniform(k1, (WIDTH, DIN))
    w2 = xavier_uniform(k2, (WIDTH, WIDTH))
    w3 = xavier_uniform(k3, (DOUT, WIDTH))

    wf_t, w1_t, w2_t, w3_t = w_fmap.T, w1.T, w2.T, w3.T

    # One-time weight prep (hoisted out of the forward path).
    wcat, w2b, w3b = jax.block_until_ready(
        prepare_weights(wf_t, w1_t, w2_t, w3_t))

    out = neural_adjoint_map_forward(x, wcat, w2b, w3b)
    out = jax.block_until_ready(out)

    ref = reference_forward(x, wf_t, w1_t, w2_t, w3_t)
    assert out.shape == (N, DOUT), out.shape
    # bf16 MXU operands (f32 accumulation) -> tolerance loosened vs f32 ref.
    max_err = float(jnp.max(jnp.abs(out - ref)))
    assert jnp.allclose(out, ref, atol=5e-2, rtol=5e-2), max_err

    print("KERNEL_OK")
</pallas_src>

<mosaic_0001>
module attributes {stable_mosaic.version = 11 : i64} {
  func.func @nam_kernel(%arg0: i32, %arg1: memref<256x32xf32, #tpu.memory_space<vmem>>, %arg2: memref<32x160xbf16, #tpu.memory_space<vmem>>, %arg3: memref<128x128xbf16, #tpu.memory_space<vmem>>, %arg4: memref<128x32xbf16, #tpu.memory_space<vmem>>, %arg5: memref<256x32xf32, #tpu.memory_space<vmem>>) attributes {dimension_semantics = [#tpu.dimension_semantics<parallel>], iteration_bounds = array<i64: 1>, scalar_prefetch = 0 : i64, scratch_operands = 0 : i64, tpu.core_type = #tpu.core_type<tc>, window_params = [{transform_indices = @transform_0, window_bounds = array<i64: 256, 32>}, {pipeline_mode = #tpu.pipeline_mode<synchronous>, transform_indices = @transform_1, window_bounds = array<i64: 32, 160>}, {pipeline_mode = #tpu.pipeline_mode<synchronous>, transform_indices = @transform_2, window_bounds = array<i64: 128, 128>}, {pipeline_mode = #tpu.pipeline_mode<synchronous>, transform_indices = @transform_3, window_bounds = array<i64: 128, 32>}, {transform_indices = @transform_4, window_bounds = array<i64: 256, 32>}]} {
    %c0 = arith.constant 0 : index
    %c0_0 = arith.constant 0 : index
    %0 = vector.load %arg1[%c0, %c0_0] : memref<256x32xf32, #tpu.memory_space<vmem>>, vector<256x32xf32>
    %1 = arith.truncf %0 : vector<256x32xf32> to vector<256x32xbf16>
    %c0_1 = arith.constant 0 : index
    %c0_2 = arith.constant 0 : index
    %2 = vector.load %arg2[%c0_1, %c0_2] : memref<32x160xbf16, #tpu.memory_space<vmem>>, vector<32x160xbf16>
    %cst = arith.constant dense<0.000000e+00> : vector<256x160xf32>
    %3 = tpu.matmul %1, %2, %cst {dimension_numbers = #tpu.dot_dimension_numbers<[1], [0], [0], [1], [0, 0, 1, 1], [], []>} : vector<256x32xbf16>, vector<32x160xbf16>, vector<256x160xf32> -> vector<256x160xf32>
    %4 = vector.extract_strided_slice %3 {offsets = [0, 0], sizes = [256, 128], strides = [1, 1]} : vector<256x160xf32> to vector<256x128xf32>
    %5 = vector.extract_strided_slice %3 {offsets = [0, 128], sizes = [256, 32], strides = [1, 1]} : vector<256x160xf32> to vector<256x32xf32>
    %cst_3 = arith.constant 0.00999999977 : f32
    %6 = vector.broadcast %cst_3 : f32 to vector<256x128xf32>
    %7 = arith.mulf %6, %4 : vector<256x128xf32>
    %8 = arith.maximumf %4, %7 : vector<256x128xf32>
    %9 = arith.truncf %8 : vector<256x128xf32> to vector<256x128xbf16>
    %c0_4 = arith.constant 0 : index
    %c0_5 = arith.constant 0 : index
    %10 = vector.load %arg3[%c0_4, %c0_5] : memref<128x128xbf16, #tpu.memory_space<vmem>>, vector<128x128xbf16>
    %cst_6 = arith.constant dense<0.000000e+00> : vector<256x128xf32>
    %11 = tpu.matmul %9, %10, %cst_6 {dimension_numbers = #tpu.dot_dimension_numbers<[1], [0], [0], [1], [0, 0, 1, 1], [], []>} : vector<256x128xbf16>, vector<128x128xbf16>, vector<256x128xf32> -> vector<256x128xf32>
    %cst_7 = arith.constant 0.00999999977 : f32
    %12 = vector.broadcast %cst_7 : f32 to vector<256x128xf32>
    %13 = arith.mulf %12, %11 : vector<256x128xf32>
    %14 = arith.maximumf %11, %13 : vector<256x128xf32>
    %15 = arith.truncf %14 : vector<256x128xf32> to vector<256x128xbf16>
    %c0_8 = arith.constant 0 : index
    %c0_9 = arith.constant 0 : index
    %16 = vector.load %arg4[%c0_8, %c0_9] : memref<128x32xbf16, #tpu.memory_space<vmem>>, vector<128x32xbf16>
    %cst_10 = arith.constant dense<0.000000e+00> : vector<256x32xf32>
    %17 = tpu.matmul %15, %16, %cst_10 {dimension_numbers = #tpu.dot_dimension_numbers<[1], [0], [0], [1], [0, 0, 1, 1], [], []>} : vector<256x128xbf16>, vector<128x32xbf16>, vector<256x32xf32> -> vector<256x32xf32>
    %18 = arith.addf %5, %17 : vector<256x32xf32>
    %c0_11 = arith.constant 0 : index
    %c0_12 = arith.constant 0 : index
    %19 = vector.load %arg5[%c0_11, %c0_12] : memref<256x32xf32, #tpu.memory_space<vmem>>, vector<256x32xf32>
    tpu.vector_store %arg5[%c0_11, %c0_12], %18 {strides = array<i32>} : memref<256x32xf32, #tpu.memory_space<vmem>>, vector<256x32xf32>,
    return
  }
  func.func @transform_0(%arg0: i32) -> (i32, i32) {
    %c0_i32 = arith.constant 0 : i32
    %c0_i32_0 = arith.constant 0 : i32
    return %arg0, %c0_i32 : i32, i32
  }
  func.func @transform_1(%arg0: i32) -> (i32, i32) {
    %c0_i32 = arith.constant 0 : i32
    %c0_i32_0 = arith.constant 0 : i32
    %c0_i32_1 = arith.constant 0 : i32
    return %c0_i32, %c0_i32_0 : i32, i32
  }
  func.func @transform_2(%arg0: i32) -> (i32, i32) {
    %c0_i32 = arith.constant 0 : i32
    %c0_i32_0 = arith.constant 0 : i32
    %c0_i32_1 = arith.constant 0 : i32
    return %c0_i32, %c0_i32_0 : i32, i32
  }
  func.func @transform_3(%arg0: i32) -> (i32, i32) {
    %c0_i32 = arith.constant 0 : i32
    %c0_i32_0 = arith.constant 0 : i32
    %c0_i32_1 = arith.constant 0 : i32
    return %c0_i32, %c0_i32_0 : i32, i32
  }
  func.func @transform_4(%arg0: i32) -> (i32, i32) {
    %c0_i32 = arith.constant 0 : i32
    %c0_i32_0 = arith.constant 0 : i32
    return %arg0, %c0_i32 : i32, i32
  }
}

</mosaic_0001>

<bundles_post_ra>
// kernel: neural_adjoint_map_forward.1
= control target key start
LH: loop header
LB: loop body
LE: loop exit
PB: predicated region body
PF: predicated region fallthrough
CT: control target
= control target key end

     0   :  { %vm90_vm0 = vcmask 261120   ;;  %s1400_s1 = inlined_call_operand.vmem [shape: bf16[32,160], index: 1, kind: input, shape index: {}]   ;;  %s1401_s0 = inlined_call_operand.vmem [shape: f32[256,32], index: 0, kind: input, shape index: {}]   ;;  %s1402_s2 = inlined_call_operand.vmem [shape: bf16[128,128], index: 2, kind: input, shape index: {}]   ;;  %s1403_s3 = inlined_call_operand.vmem [shape: bf16[128,32], index: 3, kind: input, shape index: {}]   ;;  %s1404_s4 = inlined_call_operand.vmem [shape: f32[256,32], index: 4, kind: output, shape index: {}]  }
   0x1   :  { %v861_v0 = vld [vmem:[%s1400_s1 + $0x10] sm:$0xf]  ;;  %v966_v1 = vld [vmem:[%s1400_s1 + $0x14] sm:$0xf0]  ;;  %v853_v2 = vld [vmem:[%s1400_s1] sm:$0xf] }
   0x2   :  { %v862_v3 = vor.u32 %v966_v1, %v861_v0  ;;  %v964_v4 = vld [vmem:[%s1400_s1 + $0x4] sm:$0xf0]  ;;  %v18_v6 = vld [vmem:[%s1401_s0] sm:$0xff]  ;;  %v20_v9 = vld [vmem:[%s1401_s0 + $0x10] sm:$0xff] }
   0x3   :  { %v854_v5 = vor.u32 %v964_v4, %v853_v2  ;;  %v19_v7 = vld [vmem:[%s1401_s0 + $0x8] sm:$0xff]  ;;  %v21_v10 = vld [vmem:[%s1401_s0 + $0x18] sm:$0xff]  ;;  %v22_v12 = vld [vmem:[%s1401_s0 + $0x20] sm:$0xff] }
   0x4   :  { %145 = vmatpush.bf16.msra.mxu0 %v862_v3  ;;  %v1026_v8 = vpack.c.bf16 %v19_v7, %v18_v6  ;;  %v1036_v11 = vpack.c.bf16 %v21_v10, %v20_v9  ;;  %v23_v13 = vld [vmem:[%s1401_s0 + $0x28] sm:$0xff]  ;;  %v24_v15 = vld [vmem:[%s1401_s0 + $0x30] sm:$0xff]  ;;  %v25_v16 = vld [vmem:[%s1401_s0 + $0x38] sm:$0xff] }
   0x5   :  { %v1046_v14 = vpack.c.bf16 %v23_v13, %v22_v12  ;;  %v1056_v17 = vpack.c.bf16 %v25_v16, %v24_v15  ;;  %v26_v18 = vld [vmem:[%s1401_s0 + $0x40] sm:$0xff]  ;;  %v27_v19 = vld [vmem:[%s1401_s0 + $0x48] sm:$0xff]  ;;  %v974_v21 = vld [vmem:[%s1402_s2 + $0x38] sm:$0xff] }
   0x6   :  { %v1066_v20 = vpack.c.bf16 %v27_v19, %v26_v18  ;;  %461 = vmatpush.bf16.msra.mxu2 %v974_v21  ;;  %v28_v22 = vld [vmem:[%s1401_s0 + $0x50] sm:$0xff]  ;;  %v29_v23 = vld [vmem:[%s1401_s0 + $0x58] sm:$0xff]  ;;  %v972_v26 = vld [vmem:[%s1402_s2 + $0x28] sm:$0xff] }
   0x7   :  { %v1079_v24 = vpack.c.bf16 %v29_v23, %v28_v22  ;;  %v973_v25 = vld [vmem:[%s1402_s2 + $0x30] sm:$0xff]  ;;  %v971_v27 = vld [vmem:[%s1402_s2 + $0x20] sm:$0xff]  ;;  %v31_v29 = vld [vmem:[%s1401_s0 + $0x68] sm:$0xff] }
   0x8   :  { %146 = vmatpush.bf16.msra.mxu0 %v854_v5  ;;  %v30_v28 = vld [vmem:[%s1401_s0 + $0x60] sm:$0xff]  ;;  %v970_v30 = vld [vmem:[%s1402_s2 + $0x18] sm:$0xff]  ;;  %v969_v32 = vld [vmem:[%s1402_s2 + $0x10] sm:$0xff] }
   0x9   :  { %v1101_v31 = vpack.c.bf16 %v31_v29, %v30_v28  ;;  %v968_v33 = vld [vmem:[%s1402_s2 + $0x8] sm:$0xff]  ;;  %v967_v34 = vld [vmem:[%s1402_s2] sm:$0xff]  ;;  %v32_v35 = vld [vmem:[%s1401_s0 + $0x70] sm:$0xff] }
   0xa   :  { %462 = vmatpush.bf16.msra.mxu2 %v973_v25  ;;  %v33_v36 = vld [vmem:[%s1401_s0 + $0x78] sm:$0xff]  ;;  %v34_v38 = vld [vmem:[%s1401_s0 + $0x80] sm:$0xff]  ;;  %v35_v39 = vld [vmem:[%s1401_s0 + $0x88] sm:$0xff] }
   0xb   :  { %867 = vmatmul.msk.bf16.vlgmr.msra.gmra.mxu0 %vm90_vm0, %v1026_v8  ;;  %v1120_v37 = vpack.c.bf16 %v33_v36, %v32_v35  ;;  %v1130_v40 = vpack.c.bf16 %v35_v39, %v34_v38  ;;  %v36_v47 = vld [vmem:[%s1401_s0 + $0x90] sm:$0xff]  ;;  %v37_v48 = vld [vmem:[%s1401_s0 + $0x98] sm:$0xff]  ;;  %v38_v57 = vld [vmem:[%s1401_s0 + $0xa0] sm:$0xff] }
   0xc   :  { %v1140_v50 = vpack.c.bf16 %v37_v48, %v36_v47  ;;  %v39_v58 = vld [vmem:[%s1401_s0 + $0xa8] sm:$0xff]  ;;  %v40_v3 = vld [vmem:[%s1401_s0 + $0xb0] sm:$0xff]  ;;  %v41_v4 = vld [vmem:[%s1401_s0 + $0xb8] sm:$0xff] }
   0xd   :  { %v1150_v60 = vpack.c.bf16 %v39_v58, %v38_v57  ;;  %v1160_v6 = vpack.c.bf16 %v41_v4, %v40_v3  ;;  %v42_v16 = vld [vmem:[%s1401_s0 + $0xc0] sm:$0xff]  ;;  %v43_v18 = vld [vmem:[%s1401_s0 + $0xc8] sm:$0xff]  ;;  %v44_v29 = vld [vmem:[%s1401_s0 + $0xd0] sm:$0xff] }
   0xe   :  { %463 = vmatpush.bf16.msra.mxu2 %v972_v26  ;;  %v1170_v21 = vpack.c.bf16 %v43_v18, %v42_v16  ;;  %v982_v47 = vld [vmem:[%s1403_s3 + $0x38] sm:$0xff]  ;;  %v981_v48 = vld [vmem:[%s1403_s3 + $0x30] sm:$0xff]  ;;  %v975_v18 = vld [vmem:[%s1403_s3] sm:$0xff] }
   0xf   :  { %694 = vmatpush.bf16.msra.mxu3 %v982_v47  ;;  %v48_v57 = vld [vmem:[%s1401_s0 + $0xf0] sm:$0xff]  ;;  %v49_v58 = vld [vmem:[%s1401_s0 + $0xf8] sm:$0xff] }
  0x12   :  { %464 = vmatpush.bf16.msra.mxu2 %v971_v27 }
  0x13   :  { %695 = vmatpush.bf16.msra.mxu3 %v981_v48 }
  0x16   :  { %465 = vmatpush.bf16.msra.mxu2 %v970_v30  ;;  %v45_v30 = vld [vmem:[%s1401_s0 + $0xd8] sm:$0xff] }
  0x1a   :  { %466 = vmatpush.bf16.msra.mxu2 %v969_v32 }
  0x1b   :  { %868 = vmatmul.msk.bf16.gmra.mxu0 %vm90_vm0, %v1036_v11 }
  0x1e   :  { %467 = vmatpush.bf16.msra.mxu2 %v968_v33  ;;  %v1180_v33 = vpack.c.bf16 %v45_v30, %v44_v29 }
  0x22   :  { %468 = vmatpush.bf16.msra.mxu2 %v967_v34 }
  0x2b   :  { %869 = vmatmul.msk.bf16.gmra.mxu0 %vm90_vm0, %v1046_v14 }
  0x3b   :  { %870 = vmatmul.msk.bf16.gmra.mxu0 %vm90_vm0, %v1056_v17 }
  0x4b   :  { %871 = vmatmul.msk.bf16.gmra.mxu0 %vm90_vm0, %v1066_v20 }
  0x5b   :  { %872 = vmatmul.msk.bf16.gmra.mxu0 %vm90_vm0, %v1079_v24 }
  0x6b   :  { %873 = vmatmul.msk.bf16.gmra.mxu0 %vm90_vm0, %v1101_v31 }
  0x7b   :  { %874 = vmatmul.msk.bf16.gmra.mxu0 %vm90_vm0, %v1120_v37 }
  0x88   :  { %v148_v41 = vpop.f32.mrf.mxu0 }
  0x89   :  { %v317_v42 = vmul.f32 0.01, %v148_v41 }
  0x8b   :  { %875 = vmatmul.msk.bf16.gmra.mxu0 %vm90_vm0, %v1130_v40  ;;  %v349_v45 = vmax.f32 %v148_v41, %v317_v42  ;;  %v46_v42 = vld [vmem:[%s1401_s0 + $0xe0] sm:$0xff] }
  0x90   :  { %v150_v43 = vpop.f32.mrf.mxu0 }
  0x91   :  { %v318_v44 = vmul.f32 0.01, %v150_v43 }
  0x93   :  { %v350_v46 = vmax.f32 %v150_v43, %v318_v44  ;;  %v47_v43 = vld [vmem:[%s1401_s0 + $0xe8] sm:$0xff] }
  0x95   :  { %v381_v49 = vpack.c.bf16 %v350_v46, %v349_v45  ;;  %v1190_v45 = vpack.c.bf16 %v47_v43, %v46_v42 }
  0x97   :  { %469 = vmatmul.bf16.vlgmr.msra.gmra.mxu2 %v381_v49 }
  0x98   :  { %v153_v51 = vpop.f32.mrf.mxu0 }
  0x99   :  { %v319_v52 = vmul.f32 0.01, %v153_v51 }
  0x9b   :  { %876 = vmatmul.msk.bf16.gmra.mxu0 %vm90_vm0, %v1140_v50  ;;  %v351_v55 = vmax.f32 %v153_v51, %v319_v52  ;;  %v980_v52 = vld [vmem:[%s1403_s3 + $0x28] sm:$0xff] }
  0x9c   :  { %696 = vmatpush.bf16.msra.mxu3 %v980_v52 }
  0xa0   :  { %v155_v53 = vpop.f32.mrf.mxu0 }
  0xa1   :  { %v320_v54 = vmul.f32 0.01, %v155_v53 }
  0xa3   :  { %v352_v56 = vmax.f32 %v155_v53, %v320_v54 }
  0xa5   :  { %v382_v59 = vpack.c.bf16 %v352_v56, %v351_v55  ;;  %v979_v56 = vld [vmem:[%s1403_s3 + $0x20] sm:$0xff] }
  0xa6   :  { %697 = vmatpush.bf16.msra.mxu3 %v979_v56 }
  0xa7   :  { %474 = vmatmul.bf16.gmra.mxu2 %v382_v59 }
  0xa8   :  { %v158_v61 = vpop.f32.mrf.mxu0 }
  0xa9   :  { %v321_v62 = vmul.f32 0.01, %v158_v61 }
  0xab   :  { %877 = vmatmul.msk.bf16.gmra.mxu0 %vm90_vm0, %v1150_v60  ;;  %v353_v1 = vmax.f32 %v158_v61, %v321_v62  ;;  %v1212_v61 = vpack.c.bf16 %v49_v58, %v48_v57 }
  0xb0   :  { %v160_v63 = vpop.f32.mrf.mxu0 }
  0xb1   :  { %v322_v0 = vmul.f32 0.01, %v160_v63 }
  0xb3   :  { %v354_v2 = vmax.f32 %v160_v63, %v322_v0  ;;  %v978_v63 = vld [vmem:[%s1403_s3 + $0x18] sm:$0xff]  ;;  %v977_v0 = vld [vmem:[%s1403_s3 + $0x10] sm:$0xff] }
  0xb4   :  { %698 = vmatpush.bf16.msra.mxu3 %v978_v63 }
  0xb5   :  { %v383_v5 = vpack.c.bf16 %v354_v2, %v353_v1  ;;  %v965_v1 = vld [vmem:[%s1400_s1 + $0x14] sm:$0xf]  ;;  %v863_v2 = vld [vmem:[%s1400_s1 + $0x18] sm:$0xf0] }
  0xb6   :  { %v866_v3 = vor.u32 %v965_v1, %v863_v2 }
  0xb7   :  { %479 = vmatmul.bf16.gmra.mxu2 %v383_v5 }
  0xb8   :  { %v163_v7 = vpop.f32.mrf.mxu0  ;;  %699 = vmatpush.bf16.msra.mxu3 %v977_v0  ;;  %234 = vmatpush.bf16.msra.mxu1 %v866_v3 }
  0xb9   :  { %v323_v9 = vmul.f32 0.01, %v163_v7 }
  0xbb   :  { %878 = vmatmul.msk.bf16.gmra.mxu0 %vm90_vm0, %v1160_v6  ;;  %v355_v13 = vmax.f32 %v163_v7, %v323_v9  ;;  %v976_v7 = vld [vmem:[%s1403_s3 + $0x8] sm:$0xff] }
  0xbc   :  { %700 = vmatpush.bf16.msra.mxu3 %v976_v7 }
  0xc0   :  { %v165_v10 = vpop.f32.mrf.mxu0  ;;  %701 = vmatpush.bf16.msra.mxu3 %v975_v18 }
  0xc1   :  { %v324_v12 = vmul.f32 0.01, %v165_v10 }
  0xc3   :  { %v356_v15 = vmax.f32 %v165_v10, %v324_v12  ;;  %v963_v10 = vld [vmem:[%s1400_s1 + $0x4] sm:$0xf]  ;;  %v855_v12 = vld [vmem:[%s1400_s1 + $0x8] sm:$0xf0] }
  0xc5   :  { %v384_v19 = vpack.c.bf16 %v356_v15, %v355_v13  ;;  %v858_v13 = vor.u32 %v963_v10, %v855_v12 }
  0xc7   :  { %484 = vmatmul.bf16.gmra.mxu2 %v384_v19  ;;  %235 = vmatpush.bf16.msra.mxu1 %v858_v13 }
  0xc8   :  { %v168_v22 = vpop.f32.mrf.mxu0 }
  0xc9   :  { %v325_v23 = vmul.f32 0.01, %v168_v22 }
  0xca   :  { %883 = vmatmul.msk.bf16.vlgmr.msra.gmra.mxu1 %vm90_vm0, %v1026_v8 }
  0xcb   :  { %879 = vmatmul.msk.bf16.gmra.mxu0 %vm90_vm0, %v1170_v21  ;;  %v357_v27 = vmax.f32 %v168_v22, %v325_v23 }
  0xd0   :  { %v170_v25 = vpop.f32.mrf.mxu0 }
  0xd1   :  { %v326_v26 = vmul.f32 0.01, %v170_v25 }
  0xd3   :  { %v358_v28 = vmax.f32 %v170_v25, %v326_v26 }
  0xd5   :  { %v385_v32 = vpack.c.bf16 %v358_v28, %v357_v27 }
  0xd7   :  { %489 = vmatmul.bf16.gmra.mxu2 %v385_v32 }
  0xd8   :  { %v173_v34 = vpop.f32.mrf.mxu0 }
  0xd9   :  { %v327_v35 = vmul.f32 0.01, %v173_v34 }
  0xda   :  { %884 = vmatmul.msk.bf16.gmra.mxu1 %vm90_vm0, %v1036_v11 }
  0xdb   :  { %880 = vmatmul.msk.bf16.gmra.mxu0 %vm90_vm0, %v1180_v33  ;;  %v359_v39 = vmax.f32 %v173_v34, %v327_v35 }
  0xe0   :  { %v175_v36 = vpop.f32.mrf.mxu0 }
  0xe1   :  { %v328_v38 = vmul.f32 0.01, %v175_v36 }
  0xe3   :  { %v360_v41 = vmax.f32 %v175_v36, %v328_v38 }
  0xe5   :  { %v386_v44 = vpack.c.bf16 %v360_v41, %v359_v39 }
  0xe7   :  { %494 = vmatmul.bf16.gmra.mxu2 %v386_v44 }
  0xe8   :  { %v178_v46 = vpop.f32.mrf.mxu0 }
  0xe9   :  { %v329_v49 = vmul.f32 0.01, %v178_v46 }
  0xea   :  { %885 = vmatmul.msk.bf16.gmra.mxu1 %vm90_vm0, %v1046_v14 }
  0xeb   :  { %881 = vmatmul.msk.bf16.gmra.mxu0 %vm90_vm0, %v1190_v45  ;;  %v361_v54 = vmax.f32 %v178_v46, %v329_v49 }
  0xf0   :  { %v180_v51 = vpop.f32.mrf.mxu0 }
  0xf1   :  { %v330_v53 = vmul.f32 0.01, %v180_v51 }
  0xf3   :  { %v362_v55 = vmax.f32 %v180_v51, %v330_v53 }
  0xf5   :  { %v387_v59 = vpack.c.bf16 %v362_v55, %v361_v54 }
  0xf7   :  { %499 = vmatmul.bf16.gmra.mxu2 %v387_v59 }
  0xf8   :  { %v183_v62 = vpop.f32.mrf.mxu0 }
  0xf9   :  { %v331_v4 = vmul.f32 0.01, %v183_v62 }
  0xfa   :  { %886 = vmatmul.msk.bf16.gmra.mxu1 %vm90_vm0, %v1056_v17 }
  0xfb   :  { %882 = vmatmul.msk.bf16.gmra.mxu0 %vm90_vm0, %v1212_v61  ;;  %v363_v15 = vmax.f32 %v183_v62, %v331_v4 }
 0x100   :  { %v185_v5 = vpop.f32.mrf.mxu0 }
 0x101   :  { %v332_v9 = vmul.f32 0.01, %v185_v5 }
 0x103   :  { %v364_v16 = vmax.f32 %v185_v5, %v332_v9 }
 0x105   :  { %v388_v19 = vpack.c.bf16 %v364_v16, %v363_v15 }
 0x107   :  { %504 = vmatmul.bf16.gmra.mxu2 %v388_v19 }
 0x108   :  { %v188_v22 = vpop.f32.mrf.mxu0 }
 0x109   :  { %v333_v23 = vmul.f32 0.01, %v188_v22 }
 0x10a   :  { %887 = vmatmul.msk.bf16.gmra.mxu1 %vm90_vm0, %v1066_v20 }
 0x10b   :  { %v365_v27 = vmax.f32 %v188_v22, %v333_v23 }
 0x110   :  { %v190_v25 = vpop.f32.mrf.mxu0 }
 0x111   :  { %v334_v26 = vmul.f32 0.01, %v190_v25 }
 0x113   :  { %v366_v28 = vmax.f32 %v190_v25, %v334_v26 }
 0x115   :  { %v389_v29 = vpack.c.bf16 %v366_v28, %v365_v27 }
 0x117   :  { %509 = vmatmul.bf16.gmra.mxu2 %v389_v29 }
 0x118   :  { %v193_v30 = vpop.f32.mrf.mxu0 }
 0x119   :  { %v335_v34 = vmul.f32 0.01, %v193_v30 }
 0x11a   :  { %v470_v32 = vpop.f32.mrf.mxu2  ;;  %888 = vmatmul.msk.bf16.gmra.mxu1 %vm90_vm0, %v1079_v24 }
 0x11b   :  { %v550_v36 = vmul.f32 0.01, %v470_v32  ;;  %v367_v41 = vmax.f32 %v193_v30, %v335_v34 }
 0x11d   :  { %v582_v43 = vmax.f32 %v470_v32, %v550_v36 }
 0x120   :  { %v195_v35 = vpop.f32.mrf.mxu0 }
 0x121   :  { %v336_v38 = vmul.f32 0.01, %v195_v35 }
 0x122   :  { %v472_v39 = vpop.f32.mrf.mxu2 }
 0x123   :  { %v368_v8 = vmax.f32 %v195_v35, %v336_v38  ;;  %v551_v42 = vmul.f32 0.01, %v472_v39 }
 0x125   :  { %v390_v44 = vpack.c.bf16 %v368_v8, %v367_v41  ;;  %v583_v46 = vmax.f32 %v472_v39, %v551_v42 }
 0x127   :  { %514 = vmatmul.bf16.gmra.mxu2 %v390_v44  ;;  %v614_v47 = vpack.c.bf16 %v583_v46, %v582_v43 }
 0x128   :  { %v198_v48 = vpop.f32.mrf.mxu0 }
 0x129   :  { %702 = vmatmul.bf16.vlgmr.msra.gmra.mxu3 %v614_v47  ;;  %v337_v49 = vmul.f32 0.01, %v198_v48 }
 0x12a   :  { %v475_v11 = vpop.f32.mrf.mxu2  ;;  %889 = vmatmul.msk.bf16.gmra.mxu1 %vm90_vm0, %v1101_v31 }
 0x12b   :  { %v552_v52 = vmul.f32 0.01, %v475_v11  ;;  %v369_v55 = vmax.f32 %v198_v48, %v337_v49 }
 0x12d   :  { %v584_v58 = vmax.f32 %v475_v11, %v552_v52 }
 0x130   :  { %v200_v51 = vpop.f32.mrf.mxu0 }
 0x131   :  { %v338_v53 = vmul.f32 0.01, %v200_v51 }
 0x132   :  { %v477_v54 = vpop.f32.mrf.mxu2 }
 0x133   :  { %v370_v56 = vmax.f32 %v200_v51, %v338_v53  ;;  %v553_v57 = vmul.f32 0.01, %v477_v54 }
 0x135   :  { %v391_v59 = vpack.c.bf16 %v370_v56, %v369_v55  ;;  %v585_v62 = vmax.f32 %v477_v54, %v553_v57 }
 0x137   :  { %519 = vmatmul.bf16.gmra.mxu2 %v391_v59  ;;  %v615_v63 = vpack.c.bf16 %v585_v62, %v584_v58 }
 0x138   :  { %v203_v14 = vpop.f32.mrf.mxu0 }
 0x139   :  { %707 = vmatmul.bf16.gmra.mxu3 %v615_v63  ;;  %v339_v1 = vmul.f32 0.01, %v203_v14 }
 0x13a   :  { %v480_v0 = vpop.f32.mrf.mxu2  ;;  %890 = vmatmul.msk.bf16.gmra.mxu1 %vm90_vm0, %v1120_v37 }
 0x13b   :  { %v554_v3 = vmul.f32 0.01, %v480_v0  ;;  %v371_v7 = vmax.f32 %v203_v14, %v339_v1 }
 0x13d   :  { %v586_v12 = vmax.f32 %v480_v0, %v554_v3 }
 0x140   :  { %v205_v2 = vpop.f32.mrf.mxu0 }
 0x141   :  { %v340_v4 = vmul.f32 0.01, %v205_v2 }
 0x142   :  { %v482_v5 = vpop.f32.mrf.mxu2 }
 0x143   :  { %v372_v9 = vmax.f32 %v205_v2, %v340_v4  ;;  %v555_v10 = vmul.f32 0.01, %v482_v5 }
 0x145   :  { %v392_v13 = vpack.c.bf16 %v372_v9, %v371_v7  ;;  %v587_v15 = vmax.f32 %v482_v5, %v555_v10 }
 0x147   :  { %524 = vmatmul.bf16.gmra.mxu2 %v392_v13  ;;  %v616_v16 = vpack.c.bf16 %v587_v15, %v586_v12  ;;  %v237_v13 = vpop.f32.mrf.mxu1 }
 0x148   :  { %v208_v17 = vpop.f32.mrf.mxu0 }
 0x149   :  { %712 = vmatmul.bf16.gmra.mxu3 %v616_v16  ;;  %v341_v19 = vmul.f32 0.01, %v208_v17 }
 0x14a   :  { %v485_v18 = vpop.f32.mrf.mxu2  ;;  %891 = vmatmul.msk.bf16.gmra.mxu1 %vm90_vm0, %v1130_v40 }
 0x14b   :  { %v556_v23 = vmul.f32 0.01, %v485_v18  ;;  %v373_v27 = vmax.f32 %v208_v17, %v341_v19 }
 0x14d   :  { %v588_v30 = vmax.f32 %v485_v18, %v556_v23 }
 0x14f   :  { %v239_v19 = vpop.f32.mrf.mxu1 }
 0x150   :  { %v210_v22 = vpop.f32.mrf.mxu0 }
 0x151   :  { %v342_v25 = vmul.f32 0.01, %v210_v22 }
 0x152   :  { %v487_v26 = vpop.f32.mrf.mxu2 }
 0x153   :  { %v374_v28 = vmax.f32 %v210_v22, %v342_v25  ;;  %v557_v29 = vmul.f32 0.01, %v487_v26 }
 0x155   :  { %v393_v32 = vpack.c.bf16 %v374_v28, %v373_v27  ;;  %v589_v34 = vmax.f32 %v487_v26, %v557_v29 }
 0x157   :  { %529 = vmatmul.bf16.gmra.mxu2 %v393_v32  ;;  %v617_v35 = vpack.c.bf16 %v589_v34, %v588_v30  ;;  %v242_v26 = vpop.f32.mrf.mxu1 }
 0x158   :  { %v213_v20 = vpop.f32.mrf.mxu0 }
 0x159   :  { %717 = vmatmul.bf16.gmra.mxu3 %v617_v35  ;;  %v343_v38 = vmul.f32 0.01, %v213_v20 }
 0x15a   :  { %v490_v36 = vpop.f32.mrf.mxu2  ;;  %892 = vmatmul.msk.bf16.gmra.mxu1 %vm90_vm0, %v1140_v50 }
 0x15b   :  { %v558_v41 = vmul.f32 0.01, %v490_v36  ;;  %v375_v43 = vmax.f32 %v213_v20, %v343_v38 }
 0x15d   :  { %v590_v47 = vmax.f32 %v490_v36, %v558_v41 }
 0x15f   :  { %v244_v32 = vpop.f32.mrf.mxu1 }
 0x160   :  { %v215_v39 = vpop.f32.mrf.mxu0 }
 0x161   :  { %v344_v8 = vmul.f32 0.01, %v215_v39 }
 0x162   :  { %v492_v42 = vpop.f32.mrf.mxu2 }
 0x163   :  { %v376_v44 = vmax.f32 %v215_v39, %v344_v8  ;;  %v559_v46 = vmul.f32 0.01, %v492_v42 }
 0x165   :  { %v394_v48 = vpack.c.bf16 %v376_v44, %v375_v43  ;;  %v591_v11 = vmax.f32 %v492_v42, %v559_v46 }
 0x167   :  { %534 = vmatmul.bf16.gmra.mxu2 %v394_v48  ;;  %v618_v49 = vpack.c.bf16 %v591_v11, %v590_v47  ;;  %v247_v40 = vpop.f32.mrf.mxu1 }
 0x168   :  { %v218_v24 = vpop.f32.mrf.mxu0 }
 0x169   :  { %722 = vmatmul.bf16.gmra.mxu3 %v618_v49  ;;  %v345_v52 = vmul.f32 0.01, %v218_v24 }
 0x16a   :  { %v495_v51 = vpop.f32.mrf.mxu2  ;;  %893 = vmatmul.msk.bf16.gmra.mxu1 %vm90_vm0, %v1150_v60 }
 0x16b   :  { %v560_v54 = vmul.f32 0.01, %v495_v51  ;;  %v377_v57 = vmax.f32 %v218_v24, %v345_v52 }
 0x16d   :  { %v592_v62 = vmax.f32 %v495_v51, %v560_v54 }
 0x16f   :  { %v249_v42 = vpop.f32.mrf.mxu1 }
 0x170   :  { %v220_v53 = vpop.f32.mrf.mxu0 }
 0x171   :  { %v346_v55 = vmul.f32 0.01, %v220_v53 }
 0x172   :  { %v497_v56 = vpop.f32.mrf.mxu2 }
 0x173   :  { %v378_v58 = vmax.f32 %v220_v53, %v346_v55  ;;  %v561_v59 = vmul.f32 0.01, %v497_v56 }
 0x175   :  { %v395_v63 = vpack.c.bf16 %v378_v58, %v377_v57  ;;  %v593_v14 = vmax.f32 %v497_v56, %v561_v59 }
 0x177   :  { %539 = vmatmul.bf16.gmra.mxu2 %v395_v63  ;;  %v619_v0 = vpack.c.bf16 %v593_v14, %v592_v62  ;;  %v252_v48 = vpop.f32.mrf.mxu1 }
 0x178   :  { %v223_v31 = vpop.f32.mrf.mxu0 }
 0x179   :  { %727 = vmatmul.bf16.gmra.mxu3 %v619_v0  ;;  %v347_v2 = vmul.f32 0.01, %v223_v31 }
 0x17a   :  { %v500_v1 = vpop.f32.mrf.mxu2  ;;  %894 = vmatmul.msk.bf16.gmra.mxu1 %vm90_vm0, %v1160_v6 }
 0x17b   :  { %v562_v4 = vmul.f32 0.01, %v500_v1  ;;  %v379_v9 = vmax.f32 %v223_v31, %v347_v2 }
 0x17d   :  { %v594_v15 = vmax.f32 %v500_v1, %v562_v4 }
 0x17f   :  { %v254_v53 = vpop.f32.mrf.mxu1 }
 0x180   :  { %v225_v3 = vpop.f32.mrf.mxu0 }
 0x181   :  { %v348_v5 = vmul.f32 0.01, %v225_v3 }
 0x182   :  { %v502_v7 = vpop.f32.mrf.mxu2 }
 0x183   :  { %v380_v10 = vmax.f32 %v225_v3, %v348_v5  ;;  %v563_v12 = vmul.f32 0.01, %v502_v7 }
 0x185   :  { %v396_v16 = vpack.c.bf16 %v380_v10, %v379_v9  ;;  %v595_v17 = vmax.f32 %v502_v7, %v563_v12 }
 0x187   :  { %544 = vmatmul.bf16.gmra.mxu2 %v396_v16  ;;  %v620_v18 = vpack.c.bf16 %v595_v17, %v594_v15  ;;  %v257_v59 = vpop.f32.mrf.mxu1 }
 0x189   :  { %732 = vmatmul.bf16.gmra.mxu3 %v620_v18 }
 0x18a   :  { %v505_v37 = vpop.f32.mrf.mxu2  ;;  %895 = vmatmul.msk.bf16.gmra.mxu1 %vm90_vm0, %v1170_v21 }
 0x18b   :  { %v564_v22 = vmul.f32 0.01, %v505_v37 }
 0x18d   :  { %v596_v27 = vmax.f32 %v505_v37, %v564_v22 }
 0x18f   :  { %v259_v1 = vpop.f32.mrf.mxu1 }
 0x192   :  { %v507_v23 = vpop.f32.mrf.mxu2 }
 0x193   :  { %v565_v25 = vmul.f32 0.01, %v507_v23 }
 0x195   :  { %v597_v28 = vmax.f32 %v507_v23, %v565_v25 }
 0x197   :  { %v621_v29 = vpack.c.bf16 %v597_v28, %v596_v27  ;;  %v262_v9 = vpop.f32.mrf.mxu1 }
 0x199   :  { %737 = vmatmul.bf16.gmra.mxu3 %v621_v29 }
 0x19a   :  { %v510_v30 = vpop.f32.mrf.mxu2  ;;  %896 = vmatmul.msk.bf16.gmra.mxu1 %vm90_vm0, %v1180_v33 }
 0x19b   :  { %v566_v34 = vmul.f32 0.01, %v510_v30 }
 0x19d   :  { %v598_v36 = vmax.f32 %v510_v30, %v566_v34 }
 0x19f   :  { %v264_v17 = vpop.f32.mrf.mxu1 }
 0x1a2   :  { %v512_v35 = vpop.f32.mrf.mxu2 }
 0x1a3   :  { %v567_v20 = vmul.f32 0.01, %v512_v35 }
 0x1a5   :  { %v599_v38 = vmax.f32 %v512_v35, %v567_v20 }
 0x1a7   :  { %v622_v39 = vpack.c.bf16 %v599_v38, %v598_v36  ;;  %v267_v28 = vpop.f32.mrf.mxu1 }
 0x1a9   :  { %742 = vmatmul.bf16.gmra.mxu3 %v622_v39 }
 0x1aa   :  { %v515_v41 = vpop.f32.mrf.mxu2  ;;  %897 = vmatmul.msk.bf16.gmra.mxu1 %vm90_vm0, %v1190_v45 }
 0x1ab   :  { %v568_v50 = vmul.f32 0.01, %v515_v41 }
 0x1ac   :  { %v703_v8 = vpop.f32.mrf.mxu3 }
 0x1ad   :  { %v783_v43 = vadd.f32 %v703_v8, %v237_v13  ;;  %v600_v11 = vmax.f32 %v515_v41, %v568_v50 }
 0x1af   :  { %815 = vst.msk [vmem:[%s1404_s4] sm:$0xff] %vm90_vm0, %v783_v43  ;;  %v269_v34 = vpop.f32.mrf.mxu1 }
 0x1b2   :  { %v517_v44 = vpop.f32.mrf.mxu2 }
 0x1b3   :  { %v569_v46 = vmul.f32 0.01, %v517_v44 }
 0x1b4   :  { %v705_v47 = vpop.f32.mrf.mxu3 }
 0x1b5   :  { %v601_v49 = vmax.f32 %v517_v44, %v569_v46  ;;  %v784_v24 = vadd.f32 %v705_v47, %v239_v19 }
 0x1b7   :  { %816 = vst.msk [vmem:[%s1404_s4 + $0x8] sm:$0xff] %vm90_vm0, %v784_v24  ;;  %v623_v60 = vpack.c.bf16 %v601_v49, %v600_v11 }
 0x1b9   :  { %747 = vmatmul.bf16.gmra.mxu3 %v623_v60 }
 0x1ba   :  { %v520_v51 = vpop.f32.mrf.mxu2  ;;  %898 = vmatmul.msk.bf16.gmra.mxu1 %vm90_vm0, %v1212_v61 }
 0x1bb   :  { %v570_v55 = vmul.f32 0.01, %v520_v51 }
 0x1bc   :  { %v708_v52 = vpop.f32.mrf.mxu3 }
 0x1bd   :  { %v785_v54 = vadd.f32 %v708_v52, %v242_v26  ;;  %v602_v62 = vmax.f32 %v520_v51, %v570_v55 }
 0x1bf   :  { %817 = vst.msk [vmem:[%s1404_s4 + $0x10] sm:$0xff] %vm90_vm0, %v785_v54 }
 0x1c2   :  { %v522_v56 = vpop.f32.mrf.mxu2 }
 0x1c3   :  { %v571_v57 = vmul.f32 0.01, %v522_v56 }
 0x1c4   :  { %v710_v58 = vpop.f32.mrf.mxu3 }
 0x1c5   :  { %v603_v63 = vmax.f32 %v522_v56, %v571_v57  ;;  %v786_v14 = vadd.f32 %v710_v58, %v244_v32 }
 0x1c7   :  { %818 = vst.msk [vmem:[%s1404_s4 + $0x18] sm:$0xff] %vm90_vm0, %v786_v14  ;;  %v624_v6 = vpack.c.bf16 %v603_v63, %v602_v62 }
 0x1c9   :  { %752 = vmatmul.bf16.gmra.mxu3 %v624_v6 }
 0x1ca   :  { %v525_v0 = vpop.f32.mrf.mxu2 }
 0x1cb   :  { %v572_v3 = vmul.f32 0.01, %v525_v0 }
 0x1cc   :  { %v713_v31 = vpop.f32.mrf.mxu3 }
 0x1cd   :  { %v787_v2 = vadd.f32 %v713_v31, %v247_v40  ;;  %v604_v10 = vmax.f32 %v525_v0, %v572_v3 }
 0x1cf   :  { %819 = vst.msk [vmem:[%s1404_s4 + $0x20] sm:$0xff] %vm90_vm0, %v787_v2 }
 0x1d2   :  { %v527_v4 = vpop.f32.mrf.mxu2 }
 0x1d3   :  { %v573_v5 = vmul.f32 0.01, %v527_v4 }
 0x1d4   :  { %v715_v7 = vpop.f32.mrf.mxu3 }
 0x1d5   :  { %v605_v12 = vmax.f32 %v527_v4, %v573_v5  ;;  %v788_v13 = vadd.f32 %v715_v7, %v249_v42  ;;  %v272_v42 = vpop.f32.mrf.mxu1 }
 0x1d7   :  { %820 = vst.msk [vmem:[%s1404_s4 + $0x28] sm:$0xff] %vm90_vm0, %v788_v13  ;;  %v625_v21 = vpack.c.bf16 %v605_v12, %v604_v10 }
 0x1d9   :  { %757 = vmatmul.bf16.gmra.mxu3 %v625_v21 }
 0x1da   :  { %v530_v15 = vpop.f32.mrf.mxu2 }
 0x1db   :  { %v574_v37 = vmul.f32 0.01, %v530_v15 }
 0x1dc   :  { %v718_v16 = vpop.f32.mrf.mxu3 }
 0x1dd   :  { %v789_v18 = vadd.f32 %v718_v16, %v252_v48  ;;  %v606_v25 = vmax.f32 %v530_v15, %v574_v37  ;;  %v274_v11 = vpop.f32.mrf.mxu1 }
 0x1df   :  { %821 = vst.msk [vmem:[%s1404_s4 + $0x30] sm:$0xff] %vm90_vm0, %v789_v18 }
 0x1e2   :  { %v532_v19 = vpop.f32.mrf.mxu2 }
 0x1e3   :  { %v575_v22 = vmul.f32 0.01, %v532_v19 }
 0x1e4   :  { %v720_v23 = vpop.f32.mrf.mxu3 }
 0x1e5   :  { %v607_v26 = vmax.f32 %v532_v19, %v575_v22  ;;  %v790_v27 = vadd.f32 %v720_v23, %v254_v53  ;;  %v277_v54 = vpop.f32.mrf.mxu1 }
 0x1e7   :  { %v626_v29 = vpack.c.bf16 %v607_v26, %v606_v25  ;;  %822 = vst.msk [vmem:[%s1404_s4 + $0x38] sm:$0xff] %vm90_vm0, %v790_v27 }
 0x1e9   :  { %762 = vmatmul.bf16.gmra.mxu3 %v626_v29 }
 0x1ea   :  { %v535_v33 = vpop.f32.mrf.mxu2 }
 0x1eb   :  { %v576_v35 = vmul.f32 0.01, %v535_v33 }
 0x1ec   :  { %v723_v30 = vpop.f32.mrf.mxu3 }
 0x1ed   :  { %v791_v32 = vadd.f32 %v723_v30, %v257_v59  ;;  %v608_v38 = vmax.f32 %v535_v33, %v576_v35  ;;  %v279_v6 = vpop.f32.mrf.mxu1 }
 0x1ef   :  { %823 = vst.msk [vmem:[%s1404_s4 + $0x40] sm:$0xff] %vm90_vm0, %v791_v32 }
 0x1f2   :  { %v537_v20 = vpop.f32.mrf.mxu2 }
 0x1f3   :  { %v577_v40 = vmul.f32 0.01, %v537_v20 }
 0x1f4   :  { %v725_v36 = vpop.f32.mrf.mxu3 }
 0x1f5   :  { %v609_v39 = vmax.f32 %v537_v20, %v577_v40  ;;  %v792_v41 = vadd.f32 %v725_v36, %v259_v1  ;;  %v282_v1 = vpop.f32.mrf.mxu1 }
 0x1f7   :  { %v627_v8 = vpack.c.bf16 %v609_v39, %v608_v38  ;;  %824 = vst.msk [vmem:[%s1404_s4 + $0x48] sm:$0xff] %vm90_vm0, %v792_v41 }
 0x1f9   :  { %767 = vmatmul.bf16.gmra.mxu3 %v627_v8 }
 0x1fa   :  { %v540_v45 = vpop.f32.mrf.mxu2 }
 0x1fb   :  { %v578_v44 = vmul.f32 0.01, %v540_v45 }
 0x1fc   :  { %v728_v43 = vpop.f32.mrf.mxu3 }
 0x1fd   :  { %v793_v50 = vadd.f32 %v728_v43, %v262_v9  ;;  %v610_v49 = vmax.f32 %v540_v45, %v578_v44  ;;  %v284_v5 = vpop.f32.mrf.mxu1 }
 0x1ff   :  { %825 = vst.msk [vmem:[%s1404_s4 + $0x50] sm:$0xff] %vm90_vm0, %v793_v50 }
 0x202   :  { %v542_v46 = vpop.f32.mrf.mxu2 }
 0x203   :  { %v579_v47 = vmul.f32 0.01, %v542_v46 }
 0x204   :  { %v730_v48 = vpop.f32.mrf.mxu3 }
 0x205   :  { %v611_v24 = vmax.f32 %v542_v46, %v579_v47  ;;  %v794_v60 = vadd.f32 %v730_v48, %v264_v17  ;;  %v287_v12 = vpop.f32.mrf.mxu1 }
 0x207   :  { %v628_v51 = vpack.c.bf16 %v611_v24, %v610_v49  ;;  %826 = vst.msk [vmem:[%s1404_s4 + $0x58] sm:$0xff] %vm90_vm0, %v794_v60 }
 0x209   :  { %772 = vmatmul.bf16.gmra.mxu3 %v628_v51 }
 0x20a   :  { %v545_v61 = vpop.f32.mrf.mxu2 }
 0x20b   :  { %v580_v55 = vmul.f32 0.01, %v545_v61 }
 0x20c   :  { %v733_v52 = vpop.f32.mrf.mxu3 }
 0x20d   :  { %v795_v53 = vadd.f32 %v733_v52, %v267_v28  ;;  %v612_v59 = vmax.f32 %v545_v61, %v580_v55  ;;  %v289_v15 = vpop.f32.mrf.mxu1 }
 0x20f   :  { %827 = vst.msk [vmem:[%s1404_s4 + $0x60] sm:$0xff] %vm90_vm0, %v795_v53 }
 0x212   :  { %v547_v56 = vpop.f32.mrf.mxu2 }
 0x213   :  { %v581_v57 = vmul.f32 0.01, %v547_v56 }
 0x214   :  { %v735_v58 = vpop.f32.mrf.mxu3 }
 0x215   :  { %v613_v62 = vmax.f32 %v547_v56, %v581_v57  ;;  %v796_v63 = vadd.f32 %v735_v58, %v269_v34  ;;  %v292_v18 = vpop.f32.mrf.mxu1 }
 0x217   :  { %v629_v14 = vpack.c.bf16 %v613_v62, %v612_v59  ;;  %828 = vst.msk [vmem:[%s1404_s4 + $0x68] sm:$0xff] %vm90_vm0, %v796_v63 }
 0x219   :  { %777 = vmatmul.bf16.gmra.mxu3 %v629_v14 }
 0x21c   :  { %v738_v0 = vpop.f32.mrf.mxu3 }
 0x21d   :  { %v797_v31 = vadd.f32 %v738_v0, %v272_v42  ;;  %v294_v23 = vpop.f32.mrf.mxu1 }
 0x21f   :  { %829 = vst.msk [vmem:[%s1404_s4 + $0x70] sm:$0xff] %vm90_vm0, %v797_v31 }
 0x224   :  { %v740_v2 = vpop.f32.mrf.mxu3 }
 0x225   :  { %v798_v3 = vadd.f32 %v740_v2, %v274_v11  ;;  %v297_v28 = vpop.f32.mrf.mxu1 }
 0x227   :  { %830 = vst.msk [vmem:[%s1404_s4 + $0x78] sm:$0xff] %vm90_vm0, %v798_v3 }
 0x22c   :  { %v743_v4 = vpop.f32.mrf.mxu3 }
 0x22d   :  { %v799_v7 = vadd.f32 %v743_v4, %v277_v54  ;;  %v299_v30 = vpop.f32.mrf.mxu1 }
 0x22f   :  { %831 = vst.msk [vmem:[%s1404_s4 + $0x80] sm:$0xff] %vm90_vm0, %v799_v7 }
 0x234   :  { %v745_v9 = vpop.f32.mrf.mxu3 }
 0x235   :  { %v800_v10 = vadd.f32 %v745_v9, %v279_v6  ;;  %v302_v35 = vpop.f32.mrf.mxu1 }
 0x237   :  { %832 = vst.msk [vmem:[%s1404_s4 + $0x88] sm:$0xff] %vm90_vm0, %v800_v10 }
 0x23c   :  { %v748_v13 = vpop.f32.mrf.mxu3 }
 0x23d   :  { %v801_v21 = vadd.f32 %v748_v13, %v282_v1  ;;  %v304_v36 = vpop.f32.mrf.mxu1 }
 0x23f   :  { %833 = vst.msk [vmem:[%s1404_s4 + $0x90] sm:$0xff] %vm90_vm0, %v801_v21 }
 0x244   :  { %v750_v16 = vpop.f32.mrf.mxu3 }
 0x245   :  { %v802_v17 = vadd.f32 %v750_v16, %v284_v5  ;;  %v307_v45 = vpop.f32.mrf.mxu1 }
 0x247   :  { %834 = vst.msk [vmem:[%s1404_s4 + $0x98] sm:$0xff] %vm90_vm0, %v802_v17 }
 0x24c   :  { %v753_v37 = vpop.f32.mrf.mxu3 }
 0x24d   :  { %v803_v19 = vadd.f32 %v753_v37, %v287_v12  ;;  %v309_v50 = vpop.f32.mrf.mxu1 }
 0x24f   :  { %835 = vst.msk [vmem:[%s1404_s4 + $0xa0] sm:$0xff] %vm90_vm0, %v803_v19 }
 0x254   :  { %v755_v22 = vpop.f32.mrf.mxu3 }
 0x255   :  { %v804_v25 = vadd.f32 %v755_v22, %v289_v15  ;;  %v312_v47 = vpop.f32.mrf.mxu1 }
 0x257   :  { %836 = vst.msk [vmem:[%s1404_s4 + $0xa8] sm:$0xff] %vm90_vm0, %v804_v25 }
 0x25c   :  { %v758_v26 = vpop.f32.mrf.mxu3 }
 0x25d   :  { %v805_v27 = vadd.f32 %v758_v26, %v292_v18  ;;  %v314_v49 = vpop.f32.mrf.mxu1 }
 0x25f   :  { %837 = vst.msk [vmem:[%s1404_s4 + $0xb0] sm:$0xff] %vm90_vm0, %v805_v27 }
 0x264   :  { %v760_v29 = vpop.f32.mrf.mxu3 }
 0x265   :  { %v806_v33 = vadd.f32 %v760_v29, %v294_v23 }
 0x267   :  { %838 = vst.msk [vmem:[%s1404_s4 + $0xb8] sm:$0xff] %vm90_vm0, %v806_v33 }
 0x26c   :  { %v763_v32 = vpop.f32.mrf.mxu3 }
 0x26d   :  { %v807_v34 = vadd.f32 %v763_v32, %v297_v28 }
 0x26f   :  { %839 = vst.msk [vmem:[%s1404_s4 + $0xc0] sm:$0xff] %vm90_vm0, %v807_v34 }
 0x274   :  { %v765_v20 = vpop.f32.mrf.mxu3 }
 0x275   :  { %v808_v40 = vadd.f32 %v765_v20, %v299_v30 }
 0x277   :  { %840 = vst.msk [vmem:[%s1404_s4 + $0xc8] sm:$0xff] %vm90_vm0, %v808_v40 }
 0x27c   :  { %v768_v38 = vpop.f32.mrf.mxu3 }
 0x27d   :  { %v809_v39 = vadd.f32 %v768_v38, %v302_v35 }
 0x27f   :  { %841 = vst.msk [vmem:[%s1404_s4 + $0xd0] sm:$0xff] %vm90_vm0, %v809_v39 }
 0x284   :  { %v770_v41 = vpop.f32.mrf.mxu3 }
 0x285   :  { %v810_v8 = vadd.f32 %v770_v41, %v304_v36 }
 0x287   :  { %842 = vst.msk [vmem:[%s1404_s4 + $0xd8] sm:$0xff] %vm90_vm0, %v810_v8 }
 0x28c   :  { %v773_v42 = vpop.f32.mrf.mxu3 }
 0x28d   :  { %v811_v43 = vadd.f32 %v773_v42, %v307_v45 }
 0x28f   :  { %843 = vst.msk [vmem:[%s1404_s4 + $0xe0] sm:$0xff] %vm90_vm0, %v811_v43 }
 0x294   :  { %v775_v44 = vpop.f32.mrf.mxu3 }
 0x295   :  { %v812_v46 = vadd.f32 %v775_v44, %v309_v50 }
 0x297   :  { %844 = vst.msk [vmem:[%s1404_s4 + $0xe8] sm:$0xff] %vm90_vm0, %v812_v46 }
 0x29c   :  { %v778_v48 = vpop.f32.mrf.mxu3 }
 0x29d   :  { %v813_v11 = vadd.f32 %v778_v48, %v312_v47 }
 0x29f   :  { %845 = vst.msk [vmem:[%s1404_s4 + $0xf0] sm:$0xff] %vm90_vm0, %v813_v11 }
 0x2a4   :  { %v780_v24 = vpop.f32.mrf.mxu3 }
 0x2a5   :  { %v814_v60 = vadd.f32 %v780_v24, %v314_v49 }
 0x2a7   :  { %846 = vst.msk [vmem:[%s1404_s4 + $0xf8] sm:$0xff] %vm90_vm0, %v814_v60 }

</bundles_post_ra>
